<compile_context>
chip_gen: v7x
topology: tpu7x:2x2x1
jax: 0.10.0
libtpu: 0.0.40
codegen_flags: <defaults>
</compile_context>

<pallas_src>
import functools

import jax
import jax.numpy as jnp
from jax.experimental import pallas as pl
from jax.experimental.pallas import tpu as pltpu

_LANES = 128
_SUBLANES = 8
_TILE_BUDGET_BYTES = 40 << 20   # per-call VMEM tile budget (inputs+temps+out)
_VMEM_LIMIT_CAP = 48 << 20      # <= 48 MiB: safe on v7x (64 MiB/TC) and v5e/v6e


def _round_up(x, m):
    return ((x + m - 1) // m) * m


def _auto_block_rows(n_rows, row_in_bytes, row_f32_bytes, row_out_bytes):
    """Row-block size from the VMEM tile budget.

    Budget covers: 2 inputs x 2 pipeline buffers (lane-padded), ~2 full-tile
    f32 temporaries for the elementwise chain, and the (lane-padded) output
    double buffers.
    """
    per_row = 4 * row_in_bytes + 2 * row_f32_bytes + 2 * row_out_bytes
    rows = max(_SUBLANES, (_TILE_BUDGET_BYTES // per_row) // _SUBLANES * _SUBLANES)
    rows = min(rows, _round_up(n_rows, _SUBLANES))
    if n_rows >= 2 * _SUBLANES:
        # Keep >= 2 row-blocks: lets the 'parallel' grid axis shard across
        # v7x's two TensorCores and gives the pipeline DMA to overlap.
        rows = min(rows, max(_SUBLANES, _round_up(pl.cdiv(n_rows, 2), _SUBLANES)))
    return rows


def _finalize_block_rows(bm, n_rows):
    if n_rows <= _SUBLANES:
        return n_rows                       # one block == the whole (tiny) array
    bm = max(_SUBLANES, _round_up(int(bm), _SUBLANES))
    return min(bm, _round_up(n_rows, _SUBLANES))


def _vmem_limit(bm, row_in_bytes, row_f32_bytes, row_out_bytes):
    needed = bm * (4 * row_in_bytes + 2 * row_f32_bytes + 2 * row_out_bytes)
    needed += 4 << 20                       # compiler scratch / slack
    return int(min(max(needed, 32 << 20), _VMEM_LIMIT_CAP))


def _mask_tail_rows(x, n_valid_rows, block_rows):
    """Zero rows of the (ragged) last block that lie past the true row count."""
    i = pl.program_id(0)
    row_id = jax.lax.broadcasted_iota(jnp.int32, x.shape, 0)
    return jnp.where(row_id < (n_valid_rows - i * block_rows), x, 0.0)


# ------------------------------ kernel bodies ------------------------------


def _rmse_mean_packed_kernel(yhat_ref, y_ref, psum_ref, *, d, inv_d,
                             rows_per_row, n_rows, block_rows, mask_tail):
    """Lane-packed 'mean' body: each lane-dense row carries `rows_per_row`
    logical rows of length d.  Emits the per-block sum of logical-row RMSEs
    as a lane-dense (1, 1, 128) partial (unmasked stores)."""
    diff = yhat_ref[...].astype(jnp.float32) - y_ref[...].astype(jnp.float32)
    if mask_tail:
        diff = _mask_tail_rows(diff, n_rows, block_rows)
    se = diff * diff
    lane = jax.lax.broadcasted_iota(jnp.int32, se.shape, 1)
    acc = jnp.zeros((se.shape[0], 1), jnp.float32)
    for k in range(rows_per_row):           # static, small (128 // d)
        seg = jnp.where((lane >= k * d) & (lane < (k + 1) * d), se, 0.0)
        acc = acc + jnp.sqrt(jnp.sum(seg, axis=-1, keepdims=True) * inv_d)
    block_sum = jnp.sum(acc, axis=0, keepdims=True)              # (1, 1)
    psum_ref[...] = jnp.broadcast_to(block_sum, psum_ref.shape)


def _rmse_mean_kernel(yhat_ref, y_ref, psum_ref, *, inv_d, n_rows, block_rows,
                      mask_tail):
    """Unpacked 'mean' body: per-block sum of row RMSEs, lane-dense output."""
    diff = yhat_ref[...].astype(jnp.float32) - y_ref[...].astype(jnp.float32)
    if mask_tail:
        diff = _mask_tail_rows(diff, n_rows, block_rows)
    se = diff * diff
    row_rmse = jnp.sqrt(jnp.sum(se, axis=-1, keepdims=True) * inv_d)  # (bm, 1)
    block_sum = jnp.sum(row_rmse, axis=0, keepdims=True)              # (1, 1)
    psum_ref[...] = jnp.broadcast_to(block_sum, psum_ref.shape)


def _rmse_rows_kernel(yhat_ref, y_ref, rmse_ref, *, inv_d):
    """'none' body: per-row RMSE column.  Ragged tail rows compute garbage
    but Pallas only writes back the in-bounds part of the last block."""
    diff = yhat_ref[...].astype(jnp.float32) - y_ref[...].astype(jnp.float32)
    se = diff * diff
    rmse_ref[...] = jnp.sqrt(jnp.sum(se, axis=-1, keepdims=True) * inv_d)


# --------------------------------- wrapper ----------------------------------


def rmse_loss(yhat, y, reduction="mean", block_rows=None):
    """Pallas implementation of RMSELoss.forward (matches the PyTorch module)."""
    assert yhat.shape == y.shape
    assert yhat.ndim == 2, "expecting (batch, features)"
    B, D = yhat.shape
    itemsize = yhat.dtype.itemsize
    inv_d = 1.0 / float(D)

    cost = pl.CostEstimate(
        flops=3 * B * D + 2 * B,
        transcendentals=B,
        bytes_accessed=2 * B * D * itemsize + B * 4,
    )

    if reduction == "mean":
        # Narrow-D lane packing: fold 128 // D logical rows into one lane-dense
        # row (free contiguous reshape in HBM) so every VMEM lane carries data.
        packable = (D < _LANES) and (_LANES % D == 0) and ((B * D) % _LANES == 0)
        if packable:
            rows_per_row = _LANES // D
            n_rows = (B * D) // _LANES
            yh2 = yhat.reshape(n_rows, _LANES)
            y2 = y.reshape(n_rows, _LANES)
            last_dim = _LANES
        else:
            rows_per_row = 1
            n_rows = B
            yh2, y2 = yhat, y
            last_dim = D

        d_eff = _round_up(last_dim, _LANES)          # lane-padded VMEM width
        row_in, row_f32 = d_eff * itemsize, d_eff * 4
        bm = block_rows if block_rows is not None else \
            _auto_block_rows(n_rows, row_in, row_f32, 0)
        bm = _finalize_block_rows(bm, n_rows)
        num_blocks = pl.cdiv(n_rows, bm)
        mask_tail = (n_rows % bm) != 0

        if packable:
            body = functools.partial(
                _rmse_mean_packed_kernel, d=D, inv_d=inv_d,
                rows_per_row=rows_per_row, n_rows=n_rows, block_rows=bm,
                mask_tail=mask_tail)
        else:
            body = functools.partial(
                _rmse_mean_kernel, inv_d=inv_d, n_rows=n_rows, block_rows=bm,
                mask_tail=mask_tail)

        partials = pl.pallas_call(
            body,
            out_shape=jax.ShapeDtypeStruct((num_blocks, 1, _LANES), jnp.float32),
            grid_spec=pltpu.PrefetchScalarGridSpec(
                num_scalar_prefetch=0,
                grid=(num_blocks,),
                in_specs=[pl.BlockSpec((bm, last_dim), lambda i: (i, 0)),
                          pl.BlockSpec((bm, last_dim), lambda i: (i, 0))],
                out_specs=pl.BlockSpec((1, 1, _LANES), lambda i: (i, 0, 0)),
            ),
            compiler_params=pltpu.CompilerParams(
                dimension_semantics=("parallel",),   # no carried state
                vmem_limit_bytes=_vmem_limit(bm, row_in, row_f32, 0)),
            cost_estimate=cost,
        )(yh2, y2)
        # Tiny final reduction over per-block partials in plain JAX.
        return (jnp.sum(partials[:, 0, 0]) / jnp.float32(B)).astype(yhat.dtype)

    elif reduction == "none":
        d_eff = _round_up(D, _LANES)
        row_in, row_f32 = d_eff * itemsize, d_eff * 4
        row_out = _LANES * 4                         # (bm, 1) pads to 128 lanes
        bm = block_rows if block_rows is not None else \
            _auto_block_rows(B, row_in, row_f32, row_out)
        bm = _finalize_block_rows(bm, B)
        num_blocks = pl.cdiv(B, bm)

        rmse_col = pl.pallas_call(
            functools.partial(_rmse_rows_kernel, inv_d=inv_d),
            out_shape=jax.ShapeDtypeStruct((B, 1), jnp.float32),
            grid_spec=pltpu.PrefetchScalarGridSpec(
                num_scalar_prefetch=0,
                grid=(num_blocks,),
                in_specs=[pl.BlockSpec((bm, D), lambda i: (i, 0)),
                          pl.BlockSpec((bm, D), lambda i: (i, 0))],
                out_specs=pl.BlockSpec((bm, 1), lambda i: (i, 0)),
            ),
            compiler_params=pltpu.CompilerParams(
                dimension_semantics=("parallel",),
                vmem_limit_bytes=_vmem_limit(bm, row_in, row_f32, row_out)),
            cost_estimate=cost,
        )(yhat, y)
        return rmse_col[:, 0].astype(yhat.dtype)

    raise ValueError(f"unsupported reduction: {reduction}")


if __name__ == "__main__":
    key = jax.random.PRNGKey(0)
    k1, k2 = jax.random.split(key)

    # Shapes consistent with the DNN regression head: batch=8, features=32.
    B, D = 8, 32
    yhat = jax.random.normal(k1, (B, D), dtype=jnp.float32)
    y = jax.random.normal(k2, (B, D), dtype=jnp.float32)

    out_mean = jax.block_until_ready(rmse_loss(yhat, y, reduction="mean"))
    out_none = jax.block_until_ready(rmse_loss(yhat, y, reduction="none"))

    # Pure-JAX reference (same semantics as the PyTorch module).
    ref_rmse = jnp.sqrt(jnp.mean((yhat - y) ** 2, axis=-1))
    ref_mean = jnp.mean(ref_rmse)
    assert jnp.allclose(out_none, ref_rmse, atol=1e-5, rtol=1e-5)
    assert jnp.allclose(out_mean, ref_mean, atol=1e-5, rtol=1e-5)

    # Ragged multi-block path (B*D % 128 != 0 -> no packing): exercises the
    # in-kernel tail masking ('mean') and partial-block writeback ('none').
    B2, D2 = 50, 32
    yh2 = jax.random.normal(k1, (B2, D2), dtype=jnp.float32)
    y2 = jax.random.normal(k2, (B2, D2), dtype=jnp.float32)
    ref2 = jnp.sqrt(jnp.mean((yh2 - y2) ** 2, axis=-1))
    got_mean2 = jax.block_until_ready(rmse_loss(yh2, y2, reduction="mean"))
    got_none2 = jax.block_until_ready(rmse_loss(yh2, y2, reduction="none"))
    assert jnp.allclose(got_none2, ref2, atol=1e-5, rtol=1e-5)
    assert jnp.allclose(got_mean2, jnp.mean(ref2), atol=1e-5, rtol=1e-5)

    # Lane-packed, multi-block, ragged-packed-row 'mean' path.
    B3, D3 = 104, 32            # B*D = 3328 = 26 packed rows of 128 lanes
    yh3 = jax.random.normal(k1, (B3, D3), dtype=jnp.float32)
    y3 = jax.random.normal(k2, (B3, D3), dtype=jnp.float32)
    ref3 = jnp.mean(jnp.sqrt(jnp.mean((yh3 - y3) ** 2, axis=-1)))
    got_mean3 = jax.block_until_ready(rmse_loss(yh3, y3, reduction="mean"))
    assert jnp.allclose(got_mean3, ref3, atol=1e-5, rtol=1e-5)

    print("KERNEL_OK")
</pallas_src>

<mosaic_0001>
module attributes {stable_mosaic.version = 11 : i64} {
  func.func @_rmse_mean_packed_kernel(%arg0: i32, %arg1: memref<2x128xf32, #tpu.memory_space<vmem>>, %arg2: memref<2x128xf32, #tpu.memory_space<vmem>>, %arg3: memref<1x1x128xf32, #tpu.memory_space<vmem>>) attributes {dimension_semantics = [#tpu.dimension_semantics<parallel>], iteration_bounds = array<i64: 1>, scalar_prefetch = 0 : i64, scratch_operands = 0 : i64, tpu.core_type = #tpu.core_type<tc>, window_params = [{transform_indices = @transform_0, window_bounds = array<i64: 2, 128>}, {transform_indices = @transform_1, window_bounds = array<i64: 2, 128>}, {transform_indices = @transform_2, window_bounds = array<i64: 1, 1, 128>}]} {
    %c0 = arith.constant 0 : index
    %c0_0 = arith.constant 0 : index
    %0 = vector.load %arg1[%c0, %c0_0] : memref<2x128xf32, #tpu.memory_space<vmem>>, vector<2x128xf32>
    %c0_1 = arith.constant 0 : index
    %c0_2 = arith.constant 0 : index
    %1 = vector.load %arg2[%c0_1, %c0_2] : memref<2x128xf32, #tpu.memory_space<vmem>>, vector<2x128xf32>
    %2 = arith.subf %0, %1 : vector<2x128xf32>
    %3 = arith.mulf %2, %2 : vector<2x128xf32>
    %4 = tpu.iota {dimensions = array<i32: 1>} : vector<2x128xi32>
    %cst = arith.constant 0.000000e+00 : f32
    %5 = vector.broadcast %cst : f32 to vector<2x1xf32>
    %c0_i32 = arith.constant 0 : i32
    %6 = vector.broadcast %c0_i32 : i32 to vector<2x128xi32>
    %7 = arith.cmpi sge, %4, %6 : vector<2x128xi32>
    %c32_i32 = arith.constant 32 : i32
    %8 = vector.broadcast %c32_i32 : i32 to vector<2x128xi32>
    %9 = arith.cmpi slt, %4, %8 : vector<2x128xi32>
    %10 = arith.andi %7, %9 : vector<2x128xi1>
    %cst_3 = arith.constant 0.000000e+00 : f32
    %11 = vector.broadcast %cst_3 : f32 to vector<2x128xf32>
    %12 = arith.select %10, %3, %11 : vector<2x128xi1>, vector<2x128xf32>
    %cst_4 = arith.constant dense<0.000000e+00> : vector<2xf32>
    %13 = vector.multi_reduction <add>, %12, %cst_4 [1] : vector<2x128xf32> to vector<2xf32>
    %14 = vector.shape_cast %13 : vector<2xf32> to vector<2x1xf32>
    %cst_5 = arith.constant 3.125000e-02 : f32
    %15 = vector.broadcast %cst_5 : f32 to vector<2x1xf32>
    %16 = arith.mulf %14, %15 : vector<2x1xf32>
    %17 = math.sqrt %16 : vector<2x1xf32>
    %18 = arith.addf %5, %17 : vector<2x1xf32>
    %c32_i32_6 = arith.constant 32 : i32
    %19 = vector.broadcast %c32_i32_6 : i32 to vector<2x128xi32>
    %20 = arith.cmpi sge, %4, %19 : vector<2x128xi32>
    %c64_i32 = arith.constant 64 : i32
    %21 = vector.broadcast %c64_i32 : i32 to vector<2x128xi32>
    %22 = arith.cmpi slt, %4, %21 : vector<2x128xi32>
    %23 = arith.andi %20, %22 : vector<2x128xi1>
    %cst_7 = arith.constant 0.000000e+00 : f32
    %24 = vector.broadcast %cst_7 : f32 to vector<2x128xf32>
    %25 = arith.select %23, %3, %24 : vector<2x128xi1>, vector<2x128xf32>
    %cst_8 = arith.constant dense<0.000000e+00> : vector<2xf32>
    %26 = vector.multi_reduction <add>, %25, %cst_8 [1] : vector<2x128xf32> to vector<2xf32>
    %27 = vector.shape_cast %26 : vector<2xf32> to vector<2x1xf32>
    %cst_9 = arith.constant 3.125000e-02 : f32
    %28 = vector.broadcast %cst_9 : f32 to vector<2x1xf32>
    %29 = arith.mulf %27, %28 : vector<2x1xf32>
    %30 = math.sqrt %29 : vector<2x1xf32>
    %31 = arith.addf %18, %30 : vector<2x1xf32>
    %c64_i32_10 = arith.constant 64 : i32
    %32 = vector.broadcast %c64_i32_10 : i32 to vector<2x128xi32>
    %33 = arith.cmpi sge, %4, %32 : vector<2x128xi32>
    %c96_i32 = arith.constant 96 : i32
    %34 = vector.broadcast %c96_i32 : i32 to vector<2x128xi32>
    %35 = arith.cmpi slt, %4, %34 : vector<2x128xi32>
    %36 = arith.andi %33, %35 : vector<2x128xi1>
    %cst_11 = arith.constant 0.000000e+00 : f32
    %37 = vector.broadcast %cst_11 : f32 to vector<2x128xf32>
    %38 = arith.select %36, %3, %37 : vector<2x128xi1>, vector<2x128xf32>
    %cst_12 = arith.constant dense<0.000000e+00> : vector<2xf32>
    %39 = vector.multi_reduction <add>, %38, %cst_12 [1] : vector<2x128xf32> to vector<2xf32>
    %40 = vector.shape_cast %39 : vector<2xf32> to vector<2x1xf32>
    %cst_13 = arith.constant 3.125000e-02 : f32
    %41 = vector.broadcast %cst_13 : f32 to vector<2x1xf32>
    %42 = arith.mulf %40, %41 : vector<2x1xf32>
    %43 = math.sqrt %42 : vector<2x1xf32>
    %44 = arith.addf %31, %43 : vector<2x1xf32>
    %c96_i32_14 = arith.constant 96 : i32
    %45 = vector.broadcast %c96_i32_14 : i32 to vector<2x128xi32>
    %46 = arith.cmpi sge, %4, %45 : vector<2x128xi32>
    %c128_i32 = arith.constant 128 : i32
    %47 = vector.broadcast %c128_i32 : i32 to vector<2x128xi32>
    %48 = arith.cmpi slt, %4, %47 : vector<2x128xi32>
    %49 = arith.andi %46, %48 : vector<2x128xi1>
    %cst_15 = arith.constant 0.000000e+00 : f32
    %50 = vector.broadcast %cst_15 : f32 to vector<2x128xf32>
    %51 = arith.select %49, %3, %50 : vector<2x128xi1>, vector<2x128xf32>
    %cst_16 = arith.constant dense<0.000000e+00> : vector<2xf32>
    %52 = vector.multi_reduction <add>, %51, %cst_16 [1] : vector<2x128xf32> to vector<2xf32>
    %53 = vector.shape_cast %52 : vector<2xf32> to vector<2x1xf32>
    %cst_17 = arith.constant 3.125000e-02 : f32
    %54 = vector.broadcast %cst_17 : f32 to vector<2x1xf32>
    %55 = arith.mulf %53, %54 : vector<2x1xf32>
    %56 = math.sqrt %55 : vector<2x1xf32>
    %57 = arith.addf %44, %56 : vector<2x1xf32>
    %cst_18 = arith.constant dense<0.000000e+00> : vector<1xf32>
    %58 = vector.multi_reduction <add>, %57, %cst_18 [0] : vector<2x1xf32> to vector<1xf32>
    %59 = vector.shape_cast %58 : vector<1xf32> to vector<1x1xf32>
    %60 = vector.shape_cast %59 : vector<1x1xf32> to vector<1x1x1xf32>
    %61 = vector.broadcast %60 : vector<1x1x1xf32> to vector<1x1x128xf32>
    %c0_19 = arith.constant 0 : index
    %c0_20 = arith.constant 0 : index
    %c0_21 = arith.constant 0 : index
    %62 = vector.load %arg3[%c0_19, %c0_20, %c0_21] : memref<1x1x128xf32, #tpu.memory_space<vmem>>, vector<1x1x128xf32>
    tpu.vector_store %arg3[%c0_19, %c0_20, %c0_21], %61 {strides = array<i32>} : memref<1x1x128xf32, #tpu.memory_space<vmem>>, vector<1x1x128xf32>,
    return
  }
  func.func @transform_0(%arg0: i32) -> (i32, i32) {
    %c0_i32 = arith.constant 0 : i32
    %c0_i32_0 = arith.constant 0 : i32
    return %arg0, %c0_i32 : i32, i32
  }
  func.func @transform_1(%arg0: i32) -> (i32, i32) {
    %c0_i32 = arith.constant 0 : i32
    %c0_i32_0 = arith.constant 0 : i32
    return %arg0, %c0_i32 : i32, i32
  }
  func.func @transform_2(%arg0: i32) -> (i32, i32, i32) {
    %c0_i32 = arith.constant 0 : i32
    %c0_i32_0 = arith.constant 0 : i32
    %c0_i32_1 = arith.constant 0 : i32
    return %arg0, %c0_i32, %c0_i32_0 : i32, i32, i32
  }
}

</mosaic_0001>

<bundles_post_ra>
// kernel: tpu_custom_call.1
= control target key start
LH: loop header
LB: loop body
LE: loop exit
PB: predicated region body
PF: predicated region fallthrough
CT: control target
= control target key end

     0   :  { %7 = vsyncpa [#allocation3], 0  ;;  %s225_s0 = inlined_call_operand.hbm [shape: f32[2,128], index: 0, kind: input, shape index: {}]   ;;  %s226_s1 = inlined_call_operand.vmem [shape: f32[2,128], index: 1, kind: input, shape index: {}]   ;;  %s227_s2 = inlined_call_operand.hbm [shape: f32[1,1,128], index: 2, kind: output, shape index: {}]  }
   0x1   :  { %8 = vsyncpa [#allocation4], 0  ;;  %s176_s9 = smov [#allocation2]   ;;  %s128_s13 = scalar_lea.hbm %s225_s0, 32 }
   0x2   :  { %s15_s10 = sshll.u32 %s176_s9, 4  ;;  %p129_p0 = scmp.ne.s32.totalorder %s225_s0, %s128_s13  ;;  %s16_s10 = int_to_ptr.vmem [resolvable:$true] %s15_s10 }
   0x3   :  { %p132_p1 = scmp.lt.u32.totalorder %s128_s13, %s225_s0 }
   0x5   :  { %p134_p2 = pnand %p132_p1, %p129_p0 }
   0x7   :  { %137 = shalt.err (!%p134_p2)
}
   0x8   :  { %s138_s18 = scalar_lea.vmem %s16_s10, 32  ;;  %p143_p4 = scmp.lt.s32.totalorder %s16_s10, %s16_s10 }
   0x9   :  { %p139_p3 = scmp.ne.s32.totalorder %s16_s10, %s138_s18  ;;  %p144_p5 = scmp.lt.s32.totalorder %s138_s18, %s138_s18 }
   0xb   :  { %p145_p6 = por %p144_p5, %p143_p4 }
   0xd   :  { %p146_p7 = pnand %p145_p6, %p139_p3 }
   0xf   :  { %149 = shalt.err (!%p146_p7)
}
  0x10   :  { %18 = dma.hbm_to_vmem [thread:$0]  %s225_s0, 32, %s16_s10, [#allocation3]  }
  0x11   :  { %172 = dma.done.wait [#allocation3], 32  }
  0x12   :  { %173 = vsyncadd [#allocation3], 4294967264  ;;  %v28_v0 = vlaneseq  ;;  %v24_v2 = vld [vmem:[#allocation2] sm:$0x3]  ;;  %vm34_vm8 = vcmask 1041408   ;;  %s177_s0 = smov [#allocation5]  }
  0x13   :  { %v25_v3 = vld [vmem:[%s226_s1] sm:$0x3]  ;;  %s109_s1 = sshll.u32 %s177_s0, 4  ;;  %s110_s1 = int_to_ptr.vmem [resolvable:$true] %s109_s1 }
  0x14   :  { %v29_v1 = vand.u32 127, %v28_v0  ;;  %v26_v4 = vsub.f32 %v24_v2, %v25_v3  ;;  %s150_s23 = scalar_lea.vmem %s110_s1, 16  ;;  %s154_s24 = scalar_lea.vmem %s110_s1, 32 }
  0x15   :  { %p151_p8 = scmp.ne.s32.totalorder %s110_s1, %s150_s23  ;;  %p155_p9 = scmp.lt.s32.totalorder %s110_s1, %s110_s1 }
  0x16   :  { %vm63_vm0 = vcmp.ge.s32.totalorder %v29_v1, 64  ;;  %vm64_vm1 = vcmp.lt.s32.totalorder %v29_v1, 96  ;;  %vm47_vm2 = vcmp.ge.s32.totalorder %v29_v1, 32  ;;  %vm48_vm3 = vcmp.lt.s32.totalorder %v29_v1, 64  ;;  %p156_p10 = scmp.lt.s32.totalorder %s154_s24, %s150_s23 }
  0x17   :  { %vm65_vm4 = vmand %vm63_vm0, %vm64_vm1  ;;  %vm31_vm5 = vcmp.lt.s32.totalorder %v29_v1, 32  ;;  %vm79_vm6 = vcmp.ge.s32.totalorder %v29_v1, 96  ;;  %v27_v5 = vmul.f32 %v26_v4, %v26_v4 }
  0x18   :  { %vm49_vm7 = vmand %vm47_vm2, %vm48_vm3  ;;  %p157_p11 = por %p156_p10, %p155_p9 }
  0x19   :  { %v66_v6 = vsel %vm65_vm4, %v27_v5, 0.0  ;;  %v33_v7 = vsel %vm31_vm5, %v27_v5, 0.0  ;;  %v82_v8 = vsel %vm79_vm6, %v27_v5, 0.0  ;;  %v50_v9 = vsel %vm49_vm7, %v27_v5, 0.0 }
  0x1a   :  { %v67_v10 = vsel %vm34_vm8, %v66_v6, 0.0  ;;  %v35_v11 = vsel %vm34_vm8, %v33_v7, 0.0  ;;  %v83_v12 = vsel %vm34_vm8, %v82_v8, 0.0  ;;  %v51_v13 = vsel %vm34_vm8, %v50_v9, 0.0  ;;  %p158_p12 = pnand %p157_p11, %p151_p8 }
  0x1b   :  { %68 = vadd.xlane.f32.xlu1 %v67_v10  ;;  %36 = vadd.xlane.f32.xlu0 %v35_v11 }
  0x1f   :  { %84 = vadd.xlane.f32.xlu1 %v83_v12  ;;  %52 = vadd.xlane.f32.xlu0 %v51_v13 }
  0xa8   :  { %v69_v14 = vpop.xlane.xlu1 %68  ;;  %v37_v15 = vpop.xlane.xlu0 %36 }
  0xa9   :  { %v70_v16 = vmul.f32 0.03125, %v69_v14  ;;  %v38_v17 = vmul.f32 0.03125, %v37_v15 }
  0xab   :  { %120 = vrsqrt.f32 %v70_v16  ;;  %vm41_vm9 = vcmp.eq.f32.partialorder %v38_v17, inf  ;;  %v44_v31 = vand.u32 2147483648, %v38_v17  ;;  %vm73_vm11 = vcmp.eq.f32.partialorder %v70_v16, inf }
  0xac   :  { %122 = vrsqrt.f32 %v38_v17  ;;  %v85_v18 = vpop.xlane.xlu1 %84  ;;  %v53_v19 = vpop.xlane.xlu0 %52  ;;  %vm43_vm13 = vcmp.eq.f32.partialorder %v38_v17, 0.0  ;;  %v76_v37 = vand.u32 2147483648, %v70_v16  ;;  %vm75_vm15 = vcmp.eq.f32.partialorder %v70_v16, 0.0 }
  0xad   :  { %v86_v20 = vmul.f32 0.03125, %v85_v18  ;;  %v54_v21 = vmul.f32 0.03125, %v53_v19 }
  0xaf   :  { %124 = vrsqrt.f32 %v86_v20  ;;  %vm57_vm10 = vcmp.eq.f32.partialorder %v54_v21, inf  ;;  %v60_v32 = vand.u32 2147483648, %v54_v21  ;;  %vm59_vm12 = vcmp.eq.f32.partialorder %v54_v21, 0.0 }
  0xb0   :  { %126 = vrsqrt.f32 %v54_v21  ;;  %vm89_vm14 = vcmp.eq.f32.partialorder %v86_v20, inf  ;;  %v92_v41 = vand.u32 2147483648, %v86_v20  ;;  %vm91_vm0 = vcmp.eq.f32.partialorder %v86_v20, 0.0 }
  0xb5   :  { %v121_v22 = vpop.eup %120 }
  0xb6   :  { %v123_v23 = vpop.eup %122  ;;  %v72_v26 = vmul.f32 %v121_v22, %v70_v16 }
  0xb7   :  { %v40_v24 = vmul.f32 %v123_v23, %v38_v17 }
  0xb8   :  { %v74_v34 = vsel %vm73_vm11, %v70_v16, %v72_v26 }
  0xb9   :  { %v125_v25 = vpop.eup %124  ;;  %v42_v30 = vsel %vm41_vm9, %v38_v17, %v40_v24  ;;  %v77_v40 = vsel %vm75_vm15, %v76_v37, %v74_v34 }
  0xba   :  { %v127_v27 = vpop.eup %126  ;;  %v88_v28 = vmul.f32 %v125_v25, %v86_v20  ;;  %v45_v35 = vsel %vm43_vm13, %v44_v31, %v42_v30 }
  0xbb   :  { %v56_v29 = vmul.f32 %v127_v27, %v54_v21 }
  0xbc   :  { %v90_v39 = vsel %vm89_vm14, %v86_v20, %v88_v28 }
  0xbd   :  { %v58_v33 = vsel %vm57_vm10, %v54_v21, %v56_v29  ;;  %v93_v43 = vsel %vm91_vm0, %v92_v41, %v90_v39 }
  0xbe   :  { %v61_v36 = vsel %vm59_vm12, %v60_v32, %v58_v33 }
  0xbf   :  { %v62_v38 = vadd.f32 %v61_v36, %v45_v35 }
  0xc1   :  { %v78_v42 = vadd.f32 %v77_v40, %v62_v38 }
  0xc3   :  { %v94_v44 = vadd.f32 %v93_v43, %v78_v42 }
  0xc5   :  { %v95_v45 = vsel %vm34_vm8, %v94_v44, 0.0 }
  0xc6   :  { %v96_v46 = vrot.slane %v95_v45, 4 }
  0xc8   :  { %v97_v47 = vadd.f32 %v96_v46, %v95_v45 }
  0xca   :  { %v98_v48 = vrot.slane %v97_v47, 2 }
  0xcc   :  { %v99_v49 = vadd.f32 %v98_v48, %v97_v47 }
  0xce   :  { %v100_v50 = vrot.slane %v99_v49, 1 }
  0xd0   :  { %v101_v51 = vadd.f32 %v100_v50, %v99_v49 }
  0xd2   :  { %102 = vst [vmem:[#allocation5] sm:$0x1] %v101_v51 }
  0xd3   :  { %161 = shalt.err (!%p158_p12)
}
  0xd4   :  { %s162_s27 = scalar_lea.hbm %s227_s2, 16 }
  0xd5   :  { %p163_p13 = scmp.ne.s32.totalorder %s227_s2, %s162_s27  ;;  %p166_p0 = scmp.lt.u32.totalorder %s162_s27, %s227_s2 }
  0xd7   :  { %p168_p1 = pnand %p166_p0, %p163_p13 }
  0xd9   :  { %171 = shalt.err (!%p168_p1)
}
  0xda   :  { %112 = dma.vmem_to_hbm [thread:$0]  %s110_s1, 16, %s227_s2, [#allocation4]  }
  0xdb   :  { %174 = dma.done.wait [#allocation4], 16  }
  0xdc   :  { %175 = vsyncadd [#allocation4], 4294967280 }
  0xdd   :  { %116 = vsyncpa [#allocation3], 1 }
  0xde   :  { %117 = vsyncpa [#allocation4], 1 }

</bundles_post_ra>
